<compile_context>
chip_gen: v5e
topology: v5e:2x2
jax: 0.10.0
libtpu: 0.0.40
codegen_flags: <defaults>
</compile_context>

<pallas_src>
import functools

import numpy as np
import jax
import jax.numpy as jnp
from jax.experimental import pallas as pl
from jax.experimental.pallas import tpu as pltpu


_VMEM_LIMIT = 48 * 1024 * 1024    # scoped VMEM raise: fits v7x (64 MiB phys), lifts v5e/v6e default
_POOL_BUDGET = 40 * 1024 * 1024   # live-buffer budget used when choosing span_pool tiles
_HEAD_BUDGET = 40 * 1024 * 1024   # live-buffer budget used when choosing the fc1 K tile


def _valid_tiles(dim, align=128):
    """Divisors of `dim` that are multiples of `align`, plus `dim` itself, descending."""
    cands = {dim}
    t = (dim // align) * align
    while t >= align:
        if dim % t == 0:
            cands.add(t)
        t -= align
    return sorted(cands, reverse=True)


def _choose_pool_tiles(B, S, D4, elem_bytes, budget_bytes):
    """Pick (tS, tD) for span_pool: largest tiles whose double-buffered working
    set fits the budget, preferring >=2 feature tiles (v7x megacore split) and
    larger tD (HBM-contiguous last dim) on ties."""
    d_cands = [t for t in _valid_tiles(D4) if t <= 2048] or _valid_tiles(D4)
    s_cands = [t for t in _valid_tiles(S) if t <= 512] or _valid_tiles(S)
    d_pref = [t for t in d_cands if D4 // t >= 2] or d_cands

    def need(tS, tD):
        return (3 * 2 * B * tS * tD * elem_bytes      # 3 seq streams, double-buffered
                + 2 * 3 * B * 2 * tS * elem_bytes     # span mask, double-buffered
                + 2 * 2 * 3 * B * tD * 4)             # xa/xb f32 output blocks

    def scan(d_list):
        best = None
        for tD in d_list:              # descending -> larger tD wins area ties
            for tS in s_cands:
                if need(tS, tD) <= budget_bytes and (
                        best is None or tS * tD > best[0] * best[1]):
                    best = (tS, tD)
        return best

    best = scan(d_pref) or scan(d_cands)
    if best is None:
        best = (s_cands[-1], d_cands[-1])
    return best


def _choose_head_tile(R, D4, M, out_w, budget_bytes):
    """Pick the fc1 contraction tile tK (per-D4 chunk) for the head kernel."""
    cands = [t for t in _valid_tiles(D4) if t <= 2048] or _valid_tiles(D4)
    resident = 2 * (M * M + 3 * M + M * out_w + out_w + R * out_w) * 4 + R * M * 4
    for tK in cands:
        need = (3 * 2 * tK * M + 2 * 2 * R * tK) * 4 + resident
        if need <= budget_bytes:
            return tK
    return cands[-1]


# --------------------------------------------------------------------------
# Kernel 1: fused masked span-mean pooling for all 3 pairs / 6 spans.
#   xa[p*B + b, :] = sum_s mask[p, b, 0, s] * x_p[b, s, :]   (mask carries 1/cnt)
#   xb[p*B + b, :] = sum_s mask[p, b, 1, s] * x_p[b, s, :]
# Inputs stream in bf16; accumulation is f32 on the MXU.
# --------------------------------------------------------------------------
def span_pool_kernel(mask_ref, xy_ref, yz_ref, xz_ref, xa_ref, xb_ref, *, batch):
    # xa/xb blocks are resident across the sequence-tile axis (accumulators).
    @pl.when(pl.program_id(1) == 0)
    def _():
        xa_ref[...] = jnp.zeros_like(xa_ref)
        xb_ref[...] = jnp.zeros_like(xb_ref)

    for p, x_ref in enumerate((xy_ref, yz_ref, xz_ref)):   # static 3x unroll
        m = mask_ref[p]                                    # [B, 2, tS]  bf16
        x = x_ref[...]                                     # [B, tS, tD] bf16
        pooled = jnp.einsum("bjs,bsd->bjd", m, x,
                            preferred_element_type=jnp.float32)   # [B, 2, tD] f32
        rows = pl.ds(p * batch, batch)                     # static offsets
        xa_ref[rows, :] += pooled[:, 0, :]
        xb_ref[rows, :] += pooled[:, 1, :]


def span_pool(mask, out_xy, out_yz, out_xz):
    B, S, D4 = out_xy.shape
    tS, tD = _choose_pool_tiles(B, S, D4, mask.dtype.itemsize, _POOL_BUDGET)
    grid = (D4 // tD, S // tS)          # (parallel feature tiles, seq reduction last)
    seq_spec = pl.BlockSpec((B, tS, tD), lambda d, t: (0, t, d))
    out_spec = pl.BlockSpec((3 * B, tD), lambda d, t: (0, d))
    return pl.pallas_call(
        functools.partial(span_pool_kernel, batch=B),
        grid=grid,
        out_shape=(jax.ShapeDtypeStruct((3 * B, D4), jnp.float32),
                   jax.ShapeDtypeStruct((3 * B, D4), jnp.float32)),
        in_specs=[
            pl.BlockSpec((3, B, 2, tS), lambda d, t: (0, 0, 0, t)),   # pooling mask
            seq_spec,                                                 # out_xy
            seq_spec,                                                 # out_yz
            seq_spec,                                                 # out_xz
        ],
        out_specs=(out_spec, out_spec),
        compiler_params=pltpu.CompilerParams(
            dimension_semantics=("parallel", "arbitrary"),
            vmem_limit_bytes=_VMEM_LIMIT),
    )(mask, out_xy, out_yz, out_xz)


# --------------------------------------------------------------------------
# Kernel 2: batched MLP head for all three pairs at once, fc1 K-tiled over D4.
#   h1_pre += a_k @ W1a_k + b_k @ W1b_k + (a_k*b_k) @ W1c_k       (per K chunk)
#   on last chunk:
#     h1  = tanh(h1_pre + b1); h15 = tanh(h1 @ W15 + b15)
#     z   = h15 @ [W2|W2_1|0pad] + [b2|b2_1|0pad]                 [3B, out_w]
#     out = softmax(z[:, :C]) on class lanes + sigmoid(z[:, C]) on the seg lane,
#           written as one lane-dense (128-wide) store.
# --------------------------------------------------------------------------
def mlp_heads_kernel(xa_ref, xb_ref, w1a_ref, w1b_ref, w1c_ref, b1_ref,
                     w15_ref, b15_ref, w2_ref, b2_ref, out_ref, acc_ref,
                     *, num_classes):
    k = pl.program_id(0)

    @pl.when(k == 0)
    def _():
        acc_ref[...] = jnp.zeros_like(acc_ref)

    a = xa_ref[...]                                    # [3B, tK]
    b = xb_ref[...]                                    # [3B, tK]
    acc_ref[...] += (
        jnp.dot(a, w1a_ref[...], preferred_element_type=jnp.float32)
        + jnp.dot(b, w1b_ref[...], preferred_element_type=jnp.float32)
        + jnp.dot(a * b, w1c_ref[...], preferred_element_type=jnp.float32))

    @pl.when(k == pl.num_programs(0) - 1)
    def _():
        h1 = jnp.tanh(acc_ref[...] + b1_ref[...])
        h15 = jnp.tanh(jnp.dot(h1, w15_ref[...],
                               preferred_element_type=jnp.float32) + b15_ref[...])
        z = jnp.dot(h15, w2_ref[...],
                    preferred_element_type=jnp.float32) + b2_ref[...]   # [3B, out_w]

        C = num_classes
        lane = jax.lax.broadcasted_iota(jnp.int32, z.shape, 1)
        is_cls = lane < C
        is_seg = lane == C
        # nn.Softmax() on a 2-D tensor -> softmax over dim=1 (first C lanes).
        zc = jnp.where(is_cls, z, jnp.float32(-1e30))
        m = jnp.max(zc, axis=1, keepdims=True)
        e = jnp.where(is_cls, jnp.exp(zc - m), 0.0)
        probs = e / jnp.sum(e, axis=1, keepdims=True)   # exact div keeps self-test tight
        seg = jnp.where(is_seg, 1.0 / (1.0 + jnp.exp(-z)), 0.0)
        out_ref[...] = probs + seg                      # single unmasked lane-dense store


def mlp_heads(xa, xb, params, num_classes):
    R, D4 = xa.shape                     # R = 3 * B
    M = params["w1"].shape[1]
    C = num_classes
    out_w = ((C + 1 + 127) // 128) * 128   # lane-dense padded output width

    # W1 split into its (a, b, a*b) row chunks (contiguous slices, done once in XLA).
    w1 = params["w1"]
    w1a, w1b, w1c = w1[:D4], w1[D4:2 * D4], w1[2 * D4:]
    # fc2 / fc2_1 fused and zero-padded to the lane-dense output width.
    pad = out_w - (C + 1)
    w2cat = jnp.pad(jnp.concatenate([params["w2"], params["w2_1"]], axis=1),
                    ((0, 0), (0, pad)))                              # [M, out_w]
    b2cat = jnp.pad(jnp.concatenate([params["b2"], params["b2_1"]], axis=1),
                    ((0, 0), (0, pad)))                              # [1, out_w]

    tK = _choose_head_tile(R, D4, M, out_w, _HEAD_BUDGET)
    grid = (D4 // tK,)

    def full(shape):
        return pl.BlockSpec(shape, lambda k: tuple(0 for _ in shape))

    out = pl.pallas_call(
        functools.partial(mlp_heads_kernel, num_classes=C),
        grid=grid,
        out_shape=jax.ShapeDtypeStruct((R, out_w), jnp.float32),
        in_specs=[
            pl.BlockSpec((R, tK), lambda k: (0, k)),      # xa K-chunk
            pl.BlockSpec((R, tK), lambda k: (0, k)),      # xb K-chunk
            pl.BlockSpec((tK, M), lambda k: (k, 0)),      # W1[:D4] chunk
            pl.BlockSpec((tK, M), lambda k: (k, 0)),      # W1[D4:2D4] chunk
            pl.BlockSpec((tK, M), lambda k: (k, 0)),      # W1[2D4:] chunk
            full((1, M)),                                  # b1
            full((M, M)),                                  # W15
            full((1, M)),                                  # b15
            full((M, out_w)),                              # [W2 | W2_1 | 0]
            full((1, out_w)),                              # [b2 | b2_1 | 0]
        ],
        out_specs=pl.BlockSpec((R, out_w), lambda k: (0, 0)),
        scratch_shapes=[pltpu.VMEM((R, M), jnp.float32)],  # h1_pre accumulator
        compiler_params=pltpu.CompilerParams(
            dimension_semantics=("arbitrary",),
            vmem_limit_bytes=_VMEM_LIMIT),
    )(xa, xb, w1a, w1b, w1c, params["b1"], params["w15"], params["b15"],
      w2cat, b2cat)
    return out[:, :C + 1]


# --------------------------------------------------------------------------
# Full forward (glue in plain JAX, hot path in the two kernels above)
# --------------------------------------------------------------------------
def roberta_mlp_cons_forward(out_xy, out_yz, out_xz, spans, params, num_classes):
    B, S, D4 = out_xy.shape

    # Span bookkeeping: [pair(3), batch(B), span-slot(2)] start/end indices.
    starts = jnp.stack([
        jnp.stack([spans["xy_x_s"], spans["xy_y_s"]], axis=1),
        jnp.stack([spans["yz_y_s"], spans["yz_z_s"]], axis=1),
        jnp.stack([spans["xz_x_s"], spans["xz_z_s"]], axis=1)], axis=0)
    ends = jnp.stack([
        jnp.stack([spans["xy_x_e"], spans["xy_y_e"]], axis=1),
        jnp.stack([spans["yz_y_e"], spans["yz_z_e"]], axis=1),
        jnp.stack([spans["xz_x_e"], spans["xz_z_e"]], axis=1)], axis=0)

    # Pooling weights [3, B, 2, S] (tiny, built in XLA): 1/(e-s) inside the span,
    # 0 outside; cast to bf16 for the streaming matmul.
    idx = jnp.arange(S, dtype=jnp.int32)[None, None, None, :]
    inside = (idx >= starts[..., None]) & (idx < ends[..., None])
    cnt = (ends - starts).astype(jnp.float32)[..., None]
    mask = (inside.astype(jnp.float32) / cnt).astype(jnp.bfloat16)

    # bf16 streaming of the big sequence tensors halves HBM traffic;
    # the MXU accumulates in f32.
    xa, xb = span_pool(mask,
                       out_xy.astype(jnp.bfloat16),
                       out_yz.astype(jnp.bfloat16),
                       out_xz.astype(jnp.bfloat16))       # each [3B, D4] f32

    out = mlp_heads(xa, xb, params, num_classes)          # [3B, C+1]
    out = out.reshape(3, B, num_classes + 1)
    return out[0], out[1], out[2]


# --------------------------------------------------------------------------
# Pure-JAX reference (for correctness check only; mirrors the bf16 streaming
# quantization so the tolerance stays tight)
# --------------------------------------------------------------------------
def _ref_pool(x, s, e):
    B, S, D = x.shape
    xq = x.astype(jnp.bfloat16).astype(jnp.float32)
    idx = jnp.arange(S)[None, :, None]
    inside = (idx >= s[:, None, None]) & (idx < e[:, None, None])
    w = inside.astype(jnp.float32) / (e - s)[:, None, None].astype(jnp.float32)
    wq = w.astype(jnp.bfloat16).astype(jnp.float32)
    return jnp.sum(wq * xq, axis=1)


def _ref_head(xa, xb, p, C):
    rep = jnp.concatenate([xa, xb, xa * xb], axis=1)
    h1 = jnp.tanh(rep @ p["w1"] + p["b1"])
    h15 = jnp.tanh(h1 @ p["w15"] + p["b15"])
    logits = h15 @ p["w2"] + p["b2"]
    seg = h15 @ p["w2_1"] + p["b2_1"]
    return jnp.concatenate([jax.nn.softmax(logits, axis=1),
                            jax.nn.sigmoid(seg)], axis=1)


if __name__ == "__main__":
    # Small shapes consistent with the module structure.
    B, S, H = 2, 8, 32
    D4 = 4 * H                      # concat of last-4 roberta layers
    MLP_size = 64
    num_classes = 4                 # fold=4 -> 4 hierarchy classes

    key = jax.random.PRNGKey(0)
    keys = jax.random.split(key, 16)

    # Synthetic "roberta last-4-layer" token representations.
    out_xy = jax.random.normal(keys[0], (B, S, D4), jnp.float32)
    out_yz = jax.random.normal(keys[1], (B, S, D4), jnp.float32)
    out_xz = jax.random.normal(keys[2], (B, S, D4), jnp.float32)

    # Deterministic span indices (start < end, within [0, S]).
    spans = {
        "xy_x_s": jnp.array([0, 1], jnp.int32), "xy_x_e": jnp.array([3, 5], jnp.int32),
        "xy_y_s": jnp.array([3, 5], jnp.int32), "xy_y_e": jnp.array([6, 8], jnp.int32),
        "yz_y_s": jnp.array([1, 0], jnp.int32), "yz_y_e": jnp.array([4, 3], jnp.int32),
        "yz_z_s": jnp.array([4, 3], jnp.int32), "yz_z_e": jnp.array([7, 6], jnp.int32),
        "xz_x_s": jnp.array([0, 2], jnp.int32), "xz_x_e": jnp.array([2, 4], jnp.int32),
        "xz_z_s": jnp.array([5, 4], jnp.int32), "xz_z_e": jnp.array([8, 7], jnp.int32),
    }

    # Deterministic parameter init (nn.Linear-shaped: [in, out] + bias).
    def init_lin(k, fan_in, fan_out):
        kw, kb = jax.random.split(k)
        bound = 1.0 / np.sqrt(fan_in)
        w = jax.random.uniform(kw, (fan_in, fan_out), jnp.float32, -bound, bound)
        b = jax.random.uniform(kb, (1, fan_out), jnp.float32, -bound, bound)
        return w, b

    w1, b1 = init_lin(keys[3], 3 * D4, MLP_size)       # fc1
    w15, b15 = init_lin(keys[4], MLP_size, MLP_size)   # fc15
    w2, b2 = init_lin(keys[5], MLP_size, num_classes)  # fc2
    w21, b21 = init_lin(keys[6], MLP_size, 1)          # fc2_1
    params = {"w1": w1, "b1": b1, "w15": w15, "b15": b15,
              "w2": w2, "b2": b2, "w2_1": w21, "b2_1": b21}

    alpha, beta, gamma = roberta_mlp_cons_forward(
        out_xy, out_yz, out_xz, spans, params, num_classes)
    jax.block_until_ready((alpha, beta, gamma))

    # Correctness check against a pure-JAX reference (bf16-streaming-matched).
    ref_pooled = {
        "xy_x": _ref_pool(out_xy, spans["xy_x_s"], spans["xy_x_e"]),
        "xy_y": _ref_pool(out_xy, spans["xy_y_s"], spans["xy_y_e"]),
        "yz_y": _ref_pool(out_yz, spans["yz_y_s"], spans["yz_y_e"]),
        "yz_z": _ref_pool(out_yz, spans["yz_z_s"], spans["yz_z_e"]),
        "xz_x": _ref_pool(out_xz, spans["xz_x_s"], spans["xz_x_e"]),
        "xz_z": _ref_pool(out_xz, spans["xz_z_s"], spans["xz_z_e"]),
    }
    ref_alpha = _ref_head(ref_pooled["xy_x"], ref_pooled["xy_y"], params, num_classes)
    ref_beta = _ref_head(ref_pooled["yz_y"], ref_pooled["yz_z"], params, num_classes)
    ref_gamma = _ref_head(ref_pooled["xz_x"], ref_pooled["xz_z"], params, num_classes)

    assert np.allclose(np.asarray(alpha), np.asarray(ref_alpha), atol=2e-3)
    assert np.allclose(np.asarray(beta), np.asarray(ref_beta), atol=2e-3)
    assert np.allclose(np.asarray(gamma), np.asarray(ref_gamma), atol=2e-3)

    print("KERNEL_OK")
</pallas_src>

<mosaic_0001>
module attributes {stable_mosaic.version = 11 : i64} {
  func.func @span_pool_kernel(%arg0: i32, %arg1: i32, %arg2: memref<3x2x2x8xbf16, #tpu.memory_space<vmem>>, %arg3: memref<2x8x128xbf16, #tpu.memory_space<vmem>>, %arg4: memref<2x8x128xbf16, #tpu.memory_space<vmem>>, %arg5: memref<2x8x128xbf16, #tpu.memory_space<vmem>>, %arg6: memref<6x128xf32, #tpu.memory_space<vmem>>, %arg7: memref<6x128xf32, #tpu.memory_space<vmem>>) attributes {dimension_semantics = [#tpu.dimension_semantics<parallel>, #tpu.dimension_semantics<arbitrary>], iteration_bounds = array<i64: 1, 1>, scalar_prefetch = 0 : i64, scratch_operands = 0 : i64, tpu.core_type = #tpu.core_type<tc>, window_params = [{transform_indices = @transform_0, window_bounds = array<i64: 3, 2, 2, 8>}, {transform_indices = @transform_1, window_bounds = array<i64: 2, 8, 128>}, {transform_indices = @transform_2, window_bounds = array<i64: 2, 8, 128>}, {transform_indices = @transform_3, window_bounds = array<i64: 2, 8, 128>}, {transform_indices = @transform_4, window_bounds = array<i64: 6, 128>}, {transform_indices = @transform_5, window_bounds = array<i64: 6, 128>}]} {
    %c0_i32 = arith.constant 0 : i32
    %0 = arith.cmpi eq, %arg1, %c0_i32 : i32
    %1 = arith.extui %0 : i1 to i32
    %c0_i32_0 = arith.constant 0 : i32
    %2 = arith.cmpi ne, %1, %c0_i32_0 : i32
    scf.if %2 {
      %cst_44 = arith.constant 0.000000e+00 : f32
      %45 = vector.broadcast %cst_44 : f32 to vector<6x128xf32>
      %c0_45 = arith.constant 0 : index
      %c0_46 = arith.constant 0 : index
      %46 = vector.load %arg6[%c0_45, %c0_46] : memref<6x128xf32, #tpu.memory_space<vmem>>, vector<6x128xf32>
      tpu.vector_store %arg6[%c0_45, %c0_46], %45 {strides = array<i32>} : memref<6x128xf32, #tpu.memory_space<vmem>>, vector<6x128xf32>,
      %cst_47 = arith.constant 0.000000e+00 : f32
      %47 = vector.broadcast %cst_47 : f32 to vector<6x128xf32>
      %c0_48 = arith.constant 0 : index
      %c0_49 = arith.constant 0 : index
      %48 = vector.load %arg7[%c0_48, %c0_49] : memref<6x128xf32, #tpu.memory_space<vmem>>, vector<6x128xf32>
      tpu.vector_store %arg7[%c0_48, %c0_49], %47 {strides = array<i32>} : memref<6x128xf32, #tpu.memory_space<vmem>>, vector<6x128xf32>,
    } else {
    }
    %c0 = arith.constant 0 : index
    %c0_1 = arith.constant 0 : index
    %c0_2 = arith.constant 0 : index
    %c0_3 = arith.constant 0 : index
    %3 = vector.load %arg2[%c0, %c0_1, %c0_2, %c0_3] : memref<3x2x2x8xbf16, #tpu.memory_space<vmem>>, vector<1x2x2x8xbf16>
    %4 = vector.shape_cast %3 : vector<1x2x2x8xbf16> to vector<2x2x8xbf16>
    %c0_4 = arith.constant 0 : index
    %c0_5 = arith.constant 0 : index
    %c0_6 = arith.constant 0 : index
    %5 = vector.load %arg3[%c0_4, %c0_5, %c0_6] : memref<2x8x128xbf16, #tpu.memory_space<vmem>>, vector<2x8x128xbf16>
    "tpu.trace_start"() <{level = 10 : i32, message = "bjs,bsd->bjd"}> : () -> ()
    %cst = arith.constant dense<0.000000e+00> : vector<2x2x128xf32>
    %6 = tpu.matmul %4, %5, %cst {dimension_numbers = #tpu.dot_dimension_numbers<[2], [1], [1], [2], [0, 0, 0, 1, 1, 2], [0], [0]>} : vector<2x2x8xbf16>, vector<2x8x128xbf16>, vector<2x2x128xf32> -> vector<2x2x128xf32>
    "tpu.trace_stop"() : () -> ()
    %c0_7 = arith.constant 0 : index
    %c0_8 = arith.constant 0 : index
    %7 = vector.load %arg6[%c0_7, %c0_8] : memref<6x128xf32, #tpu.memory_space<vmem>>, vector<2x128xf32>
    %8 = vector.extract_strided_slice %6 {offsets = [0, 0, 0], sizes = [2, 1, 128], strides = [1, 1, 1]} : vector<2x2x128xf32> to vector<2x1x128xf32>
    %9 = vector.shape_cast %8 : vector<2x1x128xf32> to vector<2x128xf32>
    %10 = arith.addf %7, %9 : vector<2x128xf32>
    %c0_9 = arith.constant 0 : index
    %c0_10 = arith.constant 0 : index
    %11 = vector.load %arg6[%c0_9, %c0_10] : memref<6x128xf32, #tpu.memory_space<vmem>>, vector<2x128xf32>
    tpu.vector_store %arg6[%c0_9, %c0_10], %10 {strides = array<i32>} : memref<6x128xf32, #tpu.memory_space<vmem>>, vector<2x128xf32>,
    %c0_11 = arith.constant 0 : index
    %c0_12 = arith.constant 0 : index
    %12 = vector.load %arg7[%c0_11, %c0_12] : memref<6x128xf32, #tpu.memory_space<vmem>>, vector<2x128xf32>
    %13 = vector.extract_strided_slice %6 {offsets = [0, 1, 0], sizes = [2, 1, 128], strides = [1, 1, 1]} : vector<2x2x128xf32> to vector<2x1x128xf32>
    %14 = vector.shape_cast %13 : vector<2x1x128xf32> to vector<2x128xf32>
    %15 = arith.addf %12, %14 : vector<2x128xf32>
    %c0_13 = arith.constant 0 : index
    %c0_14 = arith.constant 0 : index
    %16 = vector.load %arg7[%c0_13, %c0_14] : memref<6x128xf32, #tpu.memory_space<vmem>>, vector<2x128xf32>
    tpu.vector_store %arg7[%c0_13, %c0_14], %15 {strides = array<i32>} : memref<6x128xf32, #tpu.memory_space<vmem>>, vector<2x128xf32>,
    %c1 = arith.constant 1 : index
    %c0_15 = arith.constant 0 : index
    %c0_16 = arith.constant 0 : index
    %c0_17 = arith.constant 0 : index
    %17 = vector.load %arg2[%c1, %c0_15, %c0_16, %c0_17] : memref<3x2x2x8xbf16, #tpu.memory_space<vmem>>, vector<1x2x2x8xbf16>
    %18 = vector.shape_cast %17 : vector<1x2x2x8xbf16> to vector<2x2x8xbf16>
    %c0_18 = arith.constant 0 : index
    %c0_19 = arith.constant 0 : index
    %c0_20 = arith.constant 0 : index
    %19 = vector.load %arg4[%c0_18, %c0_19, %c0_20] : memref<2x8x128xbf16, #tpu.memory_space<vmem>>, vector<2x8x128xbf16>
    "tpu.trace_start"() <{level = 10 : i32, message = "bjs,bsd->bjd"}> : () -> ()
    %cst_21 = arith.constant dense<0.000000e+00> : vector<2x2x128xf32>
    %20 = tpu.matmul %18, %19, %cst_21 {dimension_numbers = #tpu.dot_dimension_numbers<[2], [1], [1], [2], [0, 0, 0, 1, 1, 2], [0], [0]>} : vector<2x2x8xbf16>, vector<2x8x128xbf16>, vector<2x2x128xf32> -> vector<2x2x128xf32>
    "tpu.trace_stop"() : () -> ()
    %c2 = arith.constant 2 : index
    %c0_22 = arith.constant 0 : index
    %21 = vector.load %arg6[%c2, %c0_22] : memref<6x128xf32, #tpu.memory_space<vmem>>, vector<2x128xf32>
    %22 = vector.extract_strided_slice %20 {offsets = [0, 0, 0], sizes = [2, 1, 128], strides = [1, 1, 1]} : vector<2x2x128xf32> to vector<2x1x128xf32>
    %23 = vector.shape_cast %22 : vector<2x1x128xf32> to vector<2x128xf32>
    %24 = arith.addf %21, %23 : vector<2x128xf32>
    %c2_23 = arith.constant 2 : index
    %c0_24 = arith.constant 0 : index
    %25 = vector.load %arg6[%c2_23, %c0_24] : memref<6x128xf32, #tpu.memory_space<vmem>>, vector<2x128xf32>
    tpu.vector_store %arg6[%c2_23, %c0_24], %24 {strides = array<i32>} : memref<6x128xf32, #tpu.memory_space<vmem>>, vector<2x128xf32>,
    %c2_25 = arith.constant 2 : index
    %c0_26 = arith.constant 0 : index
    %26 = vector.load %arg7[%c2_25, %c0_26] : memref<6x128xf32, #tpu.memory_space<vmem>>, vector<2x128xf32>
    %27 = vector.extract_strided_slice %20 {offsets = [0, 1, 0], sizes = [2, 1, 128], strides = [1, 1, 1]} : vector<2x2x128xf32> to vector<2x1x128xf32>
    %28 = vector.shape_cast %27 : vector<2x1x128xf32> to vector<2x128xf32>
    %29 = arith.addf %26, %28 : vector<2x128xf32>
    %c2_27 = arith.constant 2 : index
    %c0_28 = arith.constant 0 : index
    %30 = vector.load %arg7[%c2_27, %c0_28] : memref<6x128xf32, #tpu.memory_space<vmem>>, vector<2x128xf32>
    tpu.vector_store %arg7[%c2_27, %c0_28], %29 {strides = array<i32>} : memref<6x128xf32, #tpu.memory_space<vmem>>, vector<2x128xf32>,
    %c2_29 = arith.constant 2 : index
    %c0_30 = arith.constant 0 : index
    %c0_31 = arith.constant 0 : index
    %c0_32 = arith.constant 0 : index
    %31 = vector.load %arg2[%c2_29, %c0_30, %c0_31, %c0_32] : memref<3x2x2x8xbf16, #tpu.memory_space<vmem>>, vector<1x2x2x8xbf16>
    %32 = vector.shape_cast %31 : vector<1x2x2x8xbf16> to vector<2x2x8xbf16>
    %c0_33 = arith.constant 0 : index
    %c0_34 = arith.constant 0 : index
    %c0_35 = arith.constant 0 : index
    %33 = vector.load %arg5[%c0_33, %c0_34, %c0_35] : memref<2x8x128xbf16, #tpu.memory_space<vmem>>, vector<2x8x128xbf16>
    "tpu.trace_start"() <{level = 10 : i32, message = "bjs,bsd->bjd"}> : () -> ()
    %cst_36 = arith.constant dense<0.000000e+00> : vector<2x2x128xf32>
    %34 = tpu.matmul %32, %33, %cst_36 {dimension_numbers = #tpu.dot_dimension_numbers<[2], [1], [1], [2], [0, 0, 0, 1, 1, 2], [0], [0]>} : vector<2x2x8xbf16>, vector<2x8x128xbf16>, vector<2x2x128xf32> -> vector<2x2x128xf32>
    "tpu.trace_stop"() : () -> ()
    %c4 = arith.constant 4 : index
    %c0_37 = arith.constant 0 : index
    %35 = vector.load %arg6[%c4, %c0_37] : memref<6x128xf32, #tpu.memory_space<vmem>>, vector<2x128xf32>
    %36 = vector.extract_strided_slice %34 {offsets = [0, 0, 0], sizes = [2, 1, 128], strides = [1, 1, 1]} : vector<2x2x128xf32> to vector<2x1x128xf32>
    %37 = vector.shape_cast %36 : vector<2x1x128xf32> to vector<2x128xf32>
    %38 = arith.addf %35, %37 : vector<2x128xf32>
    %c4_38 = arith.constant 4 : index
    %c0_39 = arith.constant 0 : index
    %39 = vector.load %arg6[%c4_38, %c0_39] : memref<6x128xf32, #tpu.memory_space<vmem>>, vector<2x128xf32>
    tpu.vector_store %arg6[%c4_38, %c0_39], %38 {strides = array<i32>} : memref<6x128xf32, #tpu.memory_space<vmem>>, vector<2x128xf32>,
    %c4_40 = arith.constant 4 : index
    %c0_41 = arith.constant 0 : index
    %40 = vector.load %arg7[%c4_40, %c0_41] : memref<6x128xf32, #tpu.memory_space<vmem>>, vector<2x128xf32>
    %41 = vector.extract_strided_slice %34 {offsets = [0, 1, 0], sizes = [2, 1, 128], strides = [1, 1, 1]} : vector<2x2x128xf32> to vector<2x1x128xf32>
    %42 = vector.shape_cast %41 : vector<2x1x128xf32> to vector<2x128xf32>
    %43 = arith.addf %40, %42 : vector<2x128xf32>
    %c4_42 = arith.constant 4 : index
    %c0_43 = arith.constant 0 : index
    %44 = vector.load %arg7[%c4_42, %c0_43] : memref<6x128xf32, #tpu.memory_space<vmem>>, vector<2x128xf32>
    tpu.vector_store %arg7[%c4_42, %c0_43], %43 {strides = array<i32>} : memref<6x128xf32, #tpu.memory_space<vmem>>, vector<2x128xf32>,
    return
  }
  func.func @transform_0(%arg0: i32, %arg1: i32) -> (i32, i32, i32, i32) {
    %c0_i32 = arith.constant 0 : i32
    %c0_i32_0 = arith.constant 0 : i32
    %c0_i32_1 = arith.constant 0 : i32
    %c0_i32_2 = arith.constant 0 : i32
    return %c0_i32, %c0_i32_0, %c0_i32_1, %arg1 : i32, i32, i32, i32
  }
  func.func @transform_1(%arg0: i32, %arg1: i32) -> (i32, i32, i32) {
    %c0_i32 = arith.constant 0 : i32
    %c0_i32_0 = arith.constant 0 : i32
    return %c0_i32, %arg1, %arg0 : i32, i32, i32
  }
  func.func @transform_2(%arg0: i32, %arg1: i32) -> (i32, i32, i32) {
    %c0_i32 = arith.constant 0 : i32
    %c0_i32_0 = arith.constant 0 : i32
    return %c0_i32, %arg1, %arg0 : i32, i32, i32
  }
  func.func @transform_3(%arg0: i32, %arg1: i32) -> (i32, i32, i32) {
    %c0_i32 = arith.constant 0 : i32
    %c0_i32_0 = arith.constant 0 : i32
    return %c0_i32, %arg1, %arg0 : i32, i32, i32
  }
  func.func @transform_4(%arg0: i32, %arg1: i32) -> (i32, i32) {
    %c0_i32 = arith.constant 0 : i32
    %c0_i32_0 = arith.constant 0 : i32
    return %c0_i32, %arg0 : i32, i32
  }
  func.func @transform_5(%arg0: i32, %arg1: i32) -> (i32, i32) {
    %c0_i32 = arith.constant 0 : i32
    %c0_i32_0 = arith.constant 0 : i32
    return %c0_i32, %arg0 : i32, i32
  }
}

</mosaic_0001>

<bundles_post_ra>
// kernel: tpu_custom_call.1
= control target key start
LH: loop header
LB: loop body
LE: loop exit
PB: predicated region body
PF: predicated region fallthrough
CT: control target
= control target key end

     0   :  { %11 = vsyncpa [#allocation3], 0  ;;  %s547_s0 = inlined_call_operand.hbm [shape: bf16[3,2,2,8], index: 0, kind: input, shape index: {}]   ;;  %s548_s1 = inlined_call_operand.hbm [shape: bf16[2,8,128], index: 1, kind: input, shape index: {}]   ;;  %s549_s2 = inlined_call_operand.hbm [shape: bf16[2,8,128], index: 2, kind: input, shape index: {}]   ;;  %s550_s3 = inlined_call_operand.hbm [shape: bf16[2,8,128], index: 3, kind: input, shape index: {}]   ;;  %s551_s4 = inlined_call_operand.hbm [shape: f32[6,128], index: 4, kind: output, shape index: {0}]   ;;  %s552_s5 = inlined_call_operand.hbm [shape: f32[6,128], index: 5, kind: output, shape index: {1}]  }
   0x1   :  { %12 = vsyncpa [#allocation6], 0 }
   0x2   :  { %13 = vsyncpa [#allocation9], 0 }
   0x3   :  { %14 = vsyncpa [#allocation4], 0  ;;  %s33_s20 = sshll.u32 %s548_s1, 4  ;;  %s34_s20 = int_to_ptr.hbm [resolvable:$true] %s33_s20 }
   0x4   :  { %15 = vsyncpa [#allocation12], 0  ;;  %s470_s21 = smov [#allocation5]   ;;  %s20_s25 = sshll.u32 %s547_s0, 4  ;;  %s21_s25 = int_to_ptr.hbm [resolvable:$true] %s20_s25 }
   0x5   :  { %s35_s22 = sshll.u32 %s470_s21, 4  ;;  %s471_s26 = smov 64   ;;  %s36_s22 = int_to_ptr.vmem [resolvable:$true] %s35_s22 }
   0x6   :  { %s472_s27 = smov 4   ;;  %s473_s28 = smov [#allocation2]  }
   0x7   :  { %41 = dma.hbm_to_vmem [thread:$0]  %s34_s20, 128, %s36_s22, [#allocation6], %s471_s26, %s471_s26, %s472_s27  }
   0x8   :  { %s22_s29 = sshll.u32 %s473_s28, 4  ;;  %s474_s30 = smov 16   ;;  %s23_s29 = int_to_ptr.vmem [resolvable:$true] %s22_s29 }
   0x9   :  { %s475_s6 = smov 1   ;;  %s46_s8 = sshll.u32 %s549_s2, 4  ;;  %s47_s8 = int_to_ptr.hbm [resolvable:$true] %s46_s8 }
   0xa   :  { %28 = dma.hbm_to_vmem [thread:$0]  %s21_s25, 96, %s23_s29, [#allocation3], %s474_s30, %s474_s30, %s475_s6  }
   0xb   :  { %s476_s9 = smov [#allocation7]   ;;  %s59_s12 = sshll.u32 %s550_s3, 4  ;;  %s60_s12 = int_to_ptr.hbm [resolvable:$true] %s59_s12 }
   0xc   :  { %s48_s10 = sshll.u32 %s476_s9, 4  ;;  %s477_s13 = smov [#allocation8]   ;;  %s49_s10 = int_to_ptr.vmem [resolvable:$true] %s48_s10 }
   0xd   :  { %54 = dma.hbm_to_vmem [thread:$0]  %s47_s8, 128, %s49_s10, [#allocation6], %s471_s26, %s471_s26, %s472_s27  }
   0xe   :  { %s61_s14 = sshll.u32 %s477_s13, 4  ;;  %s62_s14 = int_to_ptr.vmem [resolvable:$true] %s61_s14 }
   0xf   :  { %67 = dma.hbm_to_vmem [thread:$0]  %s60_s12, 128, %s62_s14, [#allocation9], %s471_s26, %s471_s26, %s472_s27  }
  0x10   :  { %460 = dma.done.wait [#allocation3], 96  }
  0x11   :  { %461 = vsyncadd [#allocation3], 4294967200 }
  0x12   :  { %462 = dma.done.wait [#allocation6], 256  }
  0x13   :  { %463 = vsyncadd [#allocation6], 4294967040 }
  0x14   :  { %464 = dma.done.wait [#allocation9], 128  }
  0x15   :  { %465 = vsyncadd [#allocation9], 4294967168  ;;  %vm99_vm0 = vcmask 1043456   ;;  %v93_v0 = vld [vmem:[#allocation5] sm:$0xf]  ;;  %vm95_vm1 = vcmask 64512  }
  0x16   :  { %v94_v1 = vld [vmem:[#allocation5 + $0x4] sm:$0xf]  ;;  %v153_v2 = vld [vmem:[#allocation7] sm:$0xf]  ;;  %v101_v3 = vsel %vm99_vm0, %v93_v0, 0  ;;  %v478_v18 = vmov 0.0  }
  0x17   :  { %v120_v4 = vsel %vm99_vm0, %v94_v1, 0  ;;  %v159_v5 = vsel %vm99_vm0, %v153_v2, 0  ;;  %v154_v6 = vld [vmem:[#allocation7 + $0x4] sm:$0xf]  ;;  %110 = vmatpush.bf16.msra.mxu0 %v101_v3  ;;  %v91_v8 = vld [vmem:[#allocation2] sm:$0x1] }
  0x18   :  { %129 = vmatpush.bf16.msra.mxu1 %v120_v4  ;;  %v178_v7 = vsel %vm99_vm0, %v154_v6, 0  ;;  %v92_v9 = vld [vmem:[#allocation2 + $0x1] sm:$0x1]  ;;  %168 = vmatpush.bf16.msra.mxu2 %v159_v5  ;;  %v210_v10 = vld [vmem:[#allocation8] sm:$0xf]  ;;  %vm139_vm2 = vcmask 1041409  }
  0x19   :  { %187 = vmatpush.bf16.msra.mxu3 %v178_v7  ;;  %v211_v11 = vld [vmem:[#allocation8 + $0x4] sm:$0xf]  ;;  %v216_v12 = vsel %vm99_vm0, %v210_v10, 0  ;;  %v151_v14 = vld [vmem:[#allocation2 + $0x2] sm:$0x1]  ;;  %s479_s2 = smov [#allocation11]  }
  0x1a   :  { %v235_v13 = vsel %vm99_vm0, %v211_v11, 0  ;;  %v152_v15 = vld [vmem:[#allocation2 + $0x3] sm:$0x1]  ;;  %299 = vmatmul.msk.bf16.vlgmr.msra.gmra.mxu0 %vm95_vm1, %v91_v8  ;;  %v208_v16 = vld [vmem:[#allocation2 + $0x4] sm:$0x1]  ;;  %s280_s3 = sshll.u32 %s479_s2, 4  ;;  %s281_s3 = int_to_ptr.vmem [resolvable:$true] %s280_s3 }
  0x1b   :  { %300 = vmatmul.msk.bf16.vlgmr.msra.gmra.mxu1 %vm95_vm1, %v92_v9  ;;  %225 = vmatpush.bf16.msrb.mxu0 %v216_v12  ;;  %v209_v17 = vld [vmem:[#allocation2 + $0x5] sm:$0x1]  ;;  %89 = vst [vmem:[#allocation10] sm:$0x3f] %v478_v18  ;;  %s282_s17 = sshll.u32 %s552_s5, 4  ;;  %s480_s18 = smov [#allocation10]   ;;  %s283_s17 = int_to_ptr.hbm [resolvable:$true] %s282_s17 }
  0x1c   :  { %244 = vmatpush.bf16.msrb.mxu1 %v235_v13  ;;  %301 = vmatmul.msk.bf16.vlgmr.msra.gmra.mxu2 %vm95_vm1, %v151_v14  ;;  %90 = vst [vmem:[#allocation11] sm:$0x3f] %v478_v18  ;;  %s269_s19 = sshll.u32 %s480_s18, 4  ;;  %s271_s22 = sshll.u32 %s551_s4, 4  ;;  %s270_s19 = int_to_ptr.vmem [resolvable:$true] %s269_s19  ;;  %s272_s22 = int_to_ptr.hbm [resolvable:$true] %s271_s22 }
  0x1d   :  { %302 = vmatmul.msk.bf16.vlgmr.msra.gmra.mxu3 %vm95_vm1, %v152_v15 }
  0x22   :  { %v135_v22 = vld [vmem:[#allocation10] sm:$0x3]  ;;  %v193_v34 = vld [vmem:[#allocation10 + $0x2] sm:$0x3]  ;;  %v250_v46 = vld [vmem:[#allocation10 + $0x4] sm:$0x3] }
  0x23   :  { %v144_v24 = vld [vmem:[#allocation11] sm:$0x3]  ;;  %v201_v36 = vld [vmem:[#allocation11 + $0x2] sm:$0x3]  ;;  %v258_v48 = vld [vmem:[#allocation11 + $0x4] sm:$0x3] }
  0x2a   :  { %303 = vmatmul.msk.bf16.vlgmr.msrb.gmra.mxu0 %vm95_vm1, %v208_v16 }
  0x2b   :  { %304 = vmatmul.msk.bf16.vlgmr.msrb.gmra.mxu1 %vm95_vm1, %v209_v17 }
  0x97   :  { %v112_v19 = vpop.f32.mrf.mxu0 }
  0x98   :  { %v131_v20 = vpop.f32.mrf.mxu1  ;;  %v145_v21 = vrot.slane %v112_v19, 1 }
  0x99   :  { %v138_v23 = vrot.slane %v131_v20, 7 }
  0x9a   :  { %v146_v26 = vsel %vm139_vm2, %v131_v20, %v145_v21 }
  0x9b   :  { %v140_v25 = vsel %vm139_vm2, %v138_v23, %v112_v19  ;;  %v148_v28 = vadd.f32 %v146_v26, %v144_v24 }
  0x9c   :  { %v142_v27 = vadd.f32 %v140_v25, %v135_v22 }
  0x9d   :  { %149 = vst [vmem:[#allocation11] sm:$0x3] %v148_v28 }
  0x9e   :  { %143 = vst [vmem:[#allocation10] sm:$0x3] %v142_v27 }
  0x9f   :  { %v114_v29 = vpop.f32.mrf.mxu0  ;;  %v170_v31 = vpop.f32.mrf.mxu2 }
  0xa0   :  { %v133_v30 = vpop.f32.mrf.mxu1  ;;  %v189_v32 = vpop.f32.mrf.mxu3  ;;  %v202_v33 = vrot.slane %v170_v31, 1 }
  0xa1   :  { %v196_v35 = vrot.slane %v189_v32, 7 }
  0xa2   :  { %v203_v38 = vsel %vm139_vm2, %v189_v32, %v202_v33 }
  0xa3   :  { %v197_v37 = vsel %vm139_vm2, %v196_v35, %v170_v31  ;;  %v205_v40 = vadd.f32 %v203_v38, %v201_v36 }
  0xa4   :  { %v199_v39 = vadd.f32 %v197_v37, %v193_v34 }
  0xa5   :  { %206 = vst [vmem:[#allocation11 + $0x2] sm:$0x3] %v205_v40 }
  0xa6   :  { %200 = vst [vmem:[#allocation10 + $0x2] sm:$0x3] %v199_v39 }
  0xa7   :  { %v227_v41 = vpop.f32.mrf.mxu0  ;;  %v172_v43 = vpop.f32.mrf.mxu2 }
  0xa8   :  { %v246_v42 = vpop.f32.mrf.mxu1  ;;  %v191_v44 = vpop.f32.mrf.mxu3  ;;  %v259_v45 = vrot.slane %v227_v41, 1 }
  0xa9   :  { %v253_v47 = vrot.slane %v246_v42, 7 }
  0xaa   :  { %v260_v50 = vsel %vm139_vm2, %v246_v42, %v259_v45 }
  0xab   :  { %v254_v49 = vsel %vm139_vm2, %v253_v47, %v227_v41  ;;  %v262_v52 = vadd.f32 %v260_v50, %v258_v48 }
  0xac   :  { %v256_v51 = vadd.f32 %v254_v49, %v250_v46 }
  0xad   :  { %263 = vst [vmem:[#allocation11 + $0x4] sm:$0x3] %v262_v52 }
  0xae   :  { %257 = vst [vmem:[#allocation10 + $0x4] sm:$0x3] %v256_v51  ;;  %285 = dma.vmem_to_hbm [thread:$0]  %s281_s3, 128, %s283_s17, [#allocation12]  }
  0xaf   :  { %v229_v53 = vpop.f32.mrf.mxu0  ;;  %274 = dma.vmem_to_hbm [thread:$0]  %s270_s19, 128, %s272_s22, [#allocation4]  }
  0xb0   :  { %v248_v54 = vpop.f32.mrf.mxu1 }
  0xb1   :  { %466 = dma.done.wait [#allocation4], 128  }
  0xb2   :  { %467 = vsyncadd [#allocation4], 4294967168 }
  0xb3   :  { %468 = dma.done.wait [#allocation12], 128  }
  0xb4   :  { %469 = vsyncadd [#allocation12], 4294967168 }
  0xb5   :  { %294 = vsyncpa [#allocation3], 1 }
  0xb6   :  { %295 = vsyncpa [#allocation6], 1 }
  0xb7   :  { %296 = vsyncpa [#allocation9], 1 }
  0xb8   :  { %297 = vsyncpa [#allocation4], 1 }
  0xb9   :  { %298 = vsyncpa [#allocation12], 1 }

</bundles_post_ra>
